<compile_context>
chip_gen: v5e
topology: v5e:2x2
jax: 0.10.0
libtpu: 0.0.40
codegen_flags: <defaults>
</compile_context>

<pallas_src>
import functools
import math

import jax
import jax.numpy as jnp
from jax.experimental import pallas as pl
from jax.experimental.pallas import tpu as pltpu


# ------------------------------------------------------------- VMEM budgeting
def _vmem_capacity_bytes():
    try:
        info = pltpu.get_tpu_info()
        cap = getattr(info, "vmem_capacity_bytes", None)
        if cap:
            return int(cap)
    except Exception:
        pass
    return 64 * 1024 * 1024  # conservative default (v7x per-core capacity)


def _choose_rows(R, per_row_bytes, budget):
    # Largest multiple-of-8 row tile that fits the budget (capped at R rounded
    # down to a multiple of 8).  Caller guarantees R >= 8.
    tr = budget // max(per_row_bytes, 1)
    tr = (tr // 8) * 8
    r_cap = (R // 8) * 8
    return max(8, min(tr, r_cap))


# ----------------------------------------------------------- fused MLP kernel
def _mlp_kernel(x_ref, w1_ref, b1_ref, w2_ref, b2_ref, out_ref):
    # x: (B, L); w1: (L, 2E) = [gamma | beta] chains concatenated;
    # w2: (2E, 2C) block-diagonal; b2 already holds the +1 / +0 baselines.
    x = x_ref[...]
    h = jnp.maximum(
        jnp.dot(x, w1_ref[...], preferred_element_type=jnp.float32) + b1_ref[...],
        0.0)
    out_ref[...] = (
        jnp.dot(h, w2_ref[...], preferred_element_type=jnp.float32) + b2_ref[...]
    ).astype(out_ref.dtype)


def mlp_fused_pallas(x, w1, b1, w2, b2):
    B = x.shape[0]
    C2 = w2.shape[1]
    # No grid -> full arrays resident in VMEM, no double-buffering of weights.
    return pl.pallas_call(
        _mlp_kernel,
        out_shape=jax.ShapeDtypeStruct((B, C2), jnp.float32),
    )(x, w1, b1, w2, b2)


# ----------------------------------------------- single-pass fused norm kernel
def _fused_norm_kernel(x_ref, gamma_ref, beta_ref, o_ref, *, eps, n_total, denom):
    x = x_ref[...].astype(jnp.float32)
    total = jnp.sum(x, keepdims=True)        # (1, 1)
    sumsq = jnp.sum(x * x, keepdims=True)    # (1, 1)
    mean = total / n_total
    var = (sumsq - n_total * mean * mean) / denom
    inv_std = jax.lax.rsqrt(var + eps)
    scale = gamma_ref[...].astype(jnp.float32) * inv_std      # (R, 1)
    shift = beta_ref[...].astype(jnp.float32) - mean * scale  # (R, 1)
    o_ref[...] = (x * scale + shift).astype(o_ref.dtype)


# ------------------------------------------------- two-pass tiled norm kernels
def _stats_kernel(x_ref, psum_ref, psq_ref, sum_acc, sq_acc, *,
                  tile_rows, rows_total, blocks_per_core, need_mask):
    # Grid = (2 cores "parallel", row-tile axis "arbitrary").  Each core
    # accumulates its row range into (8, S) vreg-shaped scratch with pure VPU
    # adds and reduces to a scalar only once at finalize.
    c = pl.program_id(0)
    j = pl.program_id(1)

    @pl.when(j == 0)
    def _init():
        sum_acc[...] = jnp.zeros_like(sum_acc)
        sq_acc[...] = jnp.zeros_like(sq_acc)
        psum_ref[...] = jnp.zeros_like(psum_ref)
        psq_ref[...] = jnp.zeros_like(psq_ref)

    x = x_ref[...].astype(jnp.float32)
    if need_mask:
        # Ragged last tile / clamped duplicate block: zero out rows >= R.
        row_start = (c * blocks_per_core + j) * tile_rows
        row_ids = jax.lax.broadcasted_iota(jnp.int32, x.shape, 0) + row_start
        x = jnp.where(row_ids < rows_total, x, 0.0)

    xg = x.reshape(tile_rows // 8, 8, x.shape[1])   # layout-friendly view
    sum_acc[...] += jnp.sum(xg, axis=0)
    sq_acc[...] += jnp.sum(xg * xg, axis=0)

    @pl.when(j == pl.num_programs(1) - 1)
    def _fin():
        psum_ref[...] = jnp.broadcast_to(
            jnp.sum(sum_acc[...], keepdims=True), psum_ref.shape)
        psq_ref[...] = jnp.broadcast_to(
            jnp.sum(sq_acc[...], keepdims=True), psq_ref.shape)


def _apply_kernel(x_ref, gamma_ref, beta_ref, mean_ref, inv_std_ref, o_ref):
    # out = (x - mean) * inv_std * gamma + beta = x * scale + shift
    mean = mean_ref[0, 0]         # scalar from SMEM
    inv_std = inv_std_ref[0, 0]   # scalar from SMEM
    scale = gamma_ref[...] * inv_std            # (tr, 1) f32
    shift = beta_ref[...] - mean * scale        # (tr, 1) f32
    x = x_ref[...]
    if x_ref.dtype == jnp.float32:
        o_ref[...] = (x * scale + shift).astype(o_ref.dtype)
    else:
        # bf16/fp16 features: keep the full-tile math narrow (v6e/v7x bf16 VALU).
        o_ref[...] = (x * scale.astype(x.dtype) + shift.astype(x.dtype)
                      ).astype(o_ref.dtype)


# -------------------------------------------------------- normalization driver
def cbn_norm_pallas(x2d, gamma_col, beta_col, eps, *, force_two_pass=False):
    R, S = x2d.shape
    out_dtype = x2d.dtype
    in_bytes = x2d.dtype.itemsize
    out_bytes = jnp.dtype(out_dtype).itemsize
    eps = float(eps)

    # Lane padding: keep the last dim a multiple of 128 (unmasked vst stores).
    Sp = ((S + 127) // 128) * 128
    if Sp != S:
        x2d = jnp.pad(x2d, ((0, 0), (0, Sp - S)))

    n_total = float(R * S)                       # padded zeros excluded
    denom = float(max(R * S - 1, 1))             # torch.var: unbiased, guard N==1

    cap = _vmem_capacity_bytes()
    budget = (cap * 3) // 8      # ~24 MiB on v7x, ~48 MiB on v5e/v6e
    vmem_limit = int((cap * 5) // 8)

    fused_bytes = R * Sp * (in_bytes + out_bytes + 8)   # in + out + f32 copy/temps
    single_pass = (R < 8) or ((not force_two_pass) and fused_bytes <= budget)
    # TODO(synk): R < 8 with a slab too large for VMEM would need column tiling;
    # unrealistic for CBN (R = batch*channels), so it uses the fused path.

    if single_pass:
        out = pl.pallas_call(
            functools.partial(_fused_norm_kernel, eps=eps, n_total=n_total,
                              denom=denom),
            out_shape=jax.ShapeDtypeStruct((R, Sp), out_dtype),
            compiler_params=pltpu.CompilerParams(vmem_limit_bytes=vmem_limit),
        )(x2d, gamma_col, beta_col)
        return out[:, :S] if Sp != S else out

    # -------- two-pass tiled path (large slabs) --------
    # Pass 1 has no output tile, so it can take a larger row tile than pass 2.
    tr1 = _choose_rows(R, Sp * (2 * in_bytes + 4), budget)
    tr2 = _choose_rows(R, Sp * (2 * (in_bytes + out_bytes) + 4), budget)

    nb = (R + tr1 - 1) // tr1          # total row blocks for pass 1
    nbh = (nb + 1) // 2                # blocks per core
    need_mask = (R % tr1 != 0) or (2 * nbh != nb)

    psum, psq = pl.pallas_call(
        functools.partial(_stats_kernel, tile_rows=tr1, rows_total=R,
                          blocks_per_core=nbh, need_mask=need_mask),
        out_shape=(jax.ShapeDtypeStruct((16, 128), jnp.float32),
                   jax.ShapeDtypeStruct((16, 128), jnp.float32)),
        grid=(2, nbh),
        in_specs=[pl.BlockSpec(
            (tr1, Sp),
            lambda c, j: (jnp.minimum(c * nbh + j, nb - 1), 0))],
        out_specs=(pl.BlockSpec((8, 128), lambda c, j: (c, 0)),
                   pl.BlockSpec((8, 128), lambda c, j: (c, 0))),
        scratch_shapes=[pltpu.VMEM((8, Sp), jnp.float32),
                        pltpu.VMEM((8, Sp), jnp.float32)],
        compiler_params=pltpu.CompilerParams(
            dimension_semantics=("parallel", "arbitrary"),
            vmem_limit_bytes=vmem_limit),
    )(x2d)

    # Combine the two per-core partials (a handful of scalar XLA ops).
    s = psum[0, 0] + psum[8, 0]
    ss = psq[0, 0] + psq[8, 0]
    mean_s = s / n_total
    var_s = (ss - n_total * mean_s * mean_s) / denom
    inv_std_s = jax.lax.rsqrt(var_s + eps)
    mean = mean_s.reshape(1, 1)
    inv_std = inv_std_s.reshape(1, 1)

    grid2 = ((R + tr2 - 1) // tr2,)
    out = pl.pallas_call(
        _apply_kernel,
        out_shape=jax.ShapeDtypeStruct((R, Sp), out_dtype),
        grid=grid2,
        in_specs=[pl.BlockSpec((tr2, Sp), lambda i: (i, 0)),
                  pl.BlockSpec((tr2, 1), lambda i: (i, 0)),
                  pl.BlockSpec((tr2, 1), lambda i: (i, 0)),
                  pl.BlockSpec(memory_space=pltpu.MemorySpace.SMEM),
                  pl.BlockSpec(memory_space=pltpu.MemorySpace.SMEM)],
        out_specs=pl.BlockSpec((tr2, Sp), lambda i: (i, 0)),
        compiler_params=pltpu.CompilerParams(
            dimension_semantics=("parallel",),
            vmem_limit_bytes=vmem_limit),
    )(x2d, gamma_col, beta_col, mean, inv_std)
    return out[:, :S] if Sp != S else out


# ---------------------------------------------------------------- CBN "module"
def _xavier_uniform(key, fan_in, fan_out):
    a = math.sqrt(6.0 / (fan_in + fan_out))
    # weight stored as (fan_in, fan_out) so the kernel does x @ W
    return jax.random.uniform(key, (fan_in, fan_out), jnp.float32, -a, a)


class CBN:
    def __init__(self, lstm_size, emb_size, out_size, use_betas=True,
                 use_gammas=True, eps=1e-05, *, key):
        self.lstm_size = lstm_size
        self.emb_size = emb_size
        self.out_size = out_size
        self.use_betas = use_betas
        self.use_gammas = use_gammas
        self.eps = eps

        kg1, kg2, kb1, kb2 = jax.random.split(key, 4)
        # fc_gamma: Linear(lstm, emb) -> ReLU -> Linear(emb, out)
        self.g_w1 = _xavier_uniform(kg1, lstm_size, emb_size)
        self.g_b1 = jnp.full((1, emb_size), 0.1, jnp.float32)
        self.g_w2 = _xavier_uniform(kg2, emb_size, out_size)
        self.g_b2 = jnp.full((1, out_size), 0.1, jnp.float32)
        # fc_beta: same structure
        self.b_w1 = _xavier_uniform(kb1, lstm_size, emb_size)
        self.b_b1 = jnp.full((1, emb_size), 0.1, jnp.float32)
        self.b_w2 = _xavier_uniform(kb2, emb_size, out_size)
        self.b_b2 = jnp.full((1, out_size), 0.1, jnp.float32)

        # Fuse the two chains into one pair of matmuls:
        #   W1cat: (L, 2E) concatenation; W2blk: (2E, 2C) block-diagonal.
        # Baselines (gamma=1, beta=0) folded into the second-layer bias.
        self.w1_cat = jnp.concatenate([self.g_w1, self.b_w1], axis=1)
        self.b1_cat = jnp.concatenate([self.g_b1, self.b_b1], axis=1)
        w2_blk = jnp.zeros((2 * emb_size, 2 * out_size), jnp.float32)
        w2_blk = w2_blk.at[:emb_size, :out_size].set(self.g_w2)
        w2_blk = w2_blk.at[emb_size:, out_size:].set(self.b_w2)
        self.w2_blk = w2_blk
        self.b2_cat = jnp.concatenate([self.g_b2 + 1.0, self.b_b2], axis=1)

    def create_cbn_input(self, lstm_emb, batch_size, channels):
        gammas = betas = None
        if self.use_gammas or self.use_betas:
            gb = mlp_fused_pallas(lstm_emb, self.w1_cat, self.b1_cat,
                                  self.w2_blk, self.b2_cat)
            gammas = gb[:, :self.out_size]
            betas = gb[:, self.out_size:]
        if not self.use_gammas:
            gammas = jnp.ones((batch_size, channels), jnp.float32)
        if not self.use_betas:
            betas = jnp.zeros((batch_size, channels), jnp.float32)
        return gammas, betas

    def forward(self, feature, lstm_emb):
        B, C, H, W = feature.shape
        gammas, betas = self.create_cbn_input(lstm_emb, B, C)

        R, S = B * C, H * W
        out2d = cbn_norm_pallas(feature.reshape(R, S),
                                gammas.reshape(R, 1),
                                betas.reshape(R, 1),
                                self.eps)
        return out2d.reshape(B, C, H, W), lstm_emb


# ---------------------------------------------------------------------- driver
if __name__ == "__main__":
    B, C, H, W = 2, 4, 16, 16
    lstm_size, emb_size, out_size = 8, 32, C

    key = jax.random.PRNGKey(0)
    k_feat, k_emb, k_param, k_odd = jax.random.split(key, 4)
    feature = jax.random.normal(k_feat, (B, C, H, W), jnp.float32)
    lstm_emb = jax.random.normal(k_emb, (B, lstm_size), jnp.float32)

    cbn = CBN(lstm_size, emb_size, out_size, eps=1e-05, key=k_param)
    out, emb_out = cbn.forward(feature, lstm_emb)
    out = jax.block_until_ready(out)

    # Pure-JAX reference (same math as the PyTorch module, no Pallas).
    def ref_forward(feature, lstm_emb):
        hg = jnp.maximum(lstm_emb @ cbn.g_w1 + cbn.g_b1, 0.0)
        d_gamma = hg @ cbn.g_w2 + cbn.g_b2
        hb = jnp.maximum(lstm_emb @ cbn.b_w1 + cbn.b_b1, 0.0)
        d_beta = hb @ cbn.b_w2 + cbn.b_b2
        gammas = 1.0 + d_gamma
        betas = 0.0 + d_beta
        mean = jnp.mean(feature)
        var = jnp.var(feature, ddof=1)
        normalized = (feature - mean) / jnp.sqrt(var + cbn.eps)
        return normalized * gammas[:, :, None, None] + betas[:, :, None, None]

    ref = ref_forward(feature, lstm_emb)
    assert jnp.allclose(out, ref, atol=1e-4, rtol=1e-4), \
        float(jnp.max(jnp.abs(out - ref)))
    assert emb_out.shape == lstm_emb.shape

    # Also exercise the tiled two-pass path (ragged rows, 2-core split, masks)
    # on a small odd-shaped slab to make sure it compiles and is correct.
    Rr, Sr = 15, 256
    x_odd = jax.random.normal(k_odd, (Rr, Sr), jnp.float32)
    g_col = jax.random.normal(jax.random.PRNGKey(1), (Rr, 1), jnp.float32)
    b_col = jax.random.normal(jax.random.PRNGKey(2), (Rr, 1), jnp.float32)
    out_odd = jax.block_until_ready(
        cbn_norm_pallas(x_odd, g_col, b_col, 1e-5, force_two_pass=True))
    mean_o = jnp.mean(x_odd)
    var_o = jnp.var(x_odd, ddof=1)
    ref_odd = (x_odd - mean_o) / jnp.sqrt(var_o + 1e-5) * g_col + b_col
    assert jnp.allclose(out_odd, ref_odd, atol=1e-4, rtol=1e-4), \
        float(jnp.max(jnp.abs(out_odd - ref_odd)))

    print("KERNEL_OK")
</pallas_src>

<mosaic_0001>
module attributes {stable_mosaic.version = 11 : i64} {
  func.func @_mlp_kernel(%arg0: memref<2x8xf32, #tpu.memory_space<vmem>>, %arg1: memref<8x64xf32, #tpu.memory_space<vmem>>, %arg2: memref<1x64xf32, #tpu.memory_space<vmem>>, %arg3: memref<64x8xf32, #tpu.memory_space<vmem>>, %arg4: memref<1x8xf32, #tpu.memory_space<vmem>>, %arg5: memref<2x8xf32, #tpu.memory_space<vmem>>) attributes {dimension_semantics = [], scalar_prefetch = 0 : i64, scratch_operands = 0 : i64, tpu.core_type = #tpu.core_type<tc>} {
    %c0 = arith.constant 0 : index
    %c0_0 = arith.constant 0 : index
    %0 = vector.load %arg0[%c0, %c0_0] : memref<2x8xf32, #tpu.memory_space<vmem>>, vector<2x8xf32>
    %c0_1 = arith.constant 0 : index
    %c0_2 = arith.constant 0 : index
    %1 = vector.load %arg1[%c0_1, %c0_2] : memref<8x64xf32, #tpu.memory_space<vmem>>, vector<8x64xf32>
    %cst = arith.constant dense<0.000000e+00> : vector<2x64xf32>
    %2 = tpu.matmul %0, %1, %cst {dimension_numbers = #tpu.dot_dimension_numbers<[1], [0], [0], [1], [0, 0, 1, 1], [], []>} : vector<2x8xf32>, vector<8x64xf32>, vector<2x64xf32> -> vector<2x64xf32>
    %c0_3 = arith.constant 0 : index
    %c0_4 = arith.constant 0 : index
    %3 = vector.load %arg2[%c0_3, %c0_4] : memref<1x64xf32, #tpu.memory_space<vmem>>, vector<1x64xf32>
    %4 = vector.broadcast %3 : vector<1x64xf32> to vector<2x64xf32>
    %5 = arith.addf %2, %4 : vector<2x64xf32>
    %cst_5 = arith.constant 0.000000e+00 : f32
    %6 = vector.broadcast %cst_5 : f32 to vector<2x64xf32>
    %7 = arith.maximumf %5, %6 : vector<2x64xf32>
    %c0_6 = arith.constant 0 : index
    %c0_7 = arith.constant 0 : index
    %8 = vector.load %arg3[%c0_6, %c0_7] : memref<64x8xf32, #tpu.memory_space<vmem>>, vector<64x8xf32>
    %cst_8 = arith.constant dense<0.000000e+00> : vector<2x8xf32>
    %9 = tpu.matmul %7, %8, %cst_8 {dimension_numbers = #tpu.dot_dimension_numbers<[1], [0], [0], [1], [0, 0, 1, 1], [], []>} : vector<2x64xf32>, vector<64x8xf32>, vector<2x8xf32> -> vector<2x8xf32>
    %c0_9 = arith.constant 0 : index
    %c0_10 = arith.constant 0 : index
    %10 = vector.load %arg4[%c0_9, %c0_10] : memref<1x8xf32, #tpu.memory_space<vmem>>, vector<1x8xf32>
    %11 = vector.broadcast %10 : vector<1x8xf32> to vector<2x8xf32>
    %12 = arith.addf %9, %11 : vector<2x8xf32>
    %c0_11 = arith.constant 0 : index
    %c0_12 = arith.constant 0 : index
    %13 = vector.load %arg5[%c0_11, %c0_12] : memref<2x8xf32, #tpu.memory_space<vmem>>, vector<2x8xf32>
    tpu.vector_store %arg5[%c0_11, %c0_12], %12 {strides = array<i32>} : memref<2x8xf32, #tpu.memory_space<vmem>>, vector<2x8xf32>,
    return
  }
}

</mosaic_0001>

<bundles_post_ra>
// kernel: tpu_custom_call.1
= control target key start
LH: loop header
LB: loop body
LE: loop exit
PB: predicated region body
PF: predicated region fallthrough
CT: control target
= control target key end

     0   :  { %vm27_vm0 = vcmask 64512   ;;  %s207_s0 = inlined_call_operand.vmem [shape: f32[2,8], index: 0, kind: input, shape index: {}]   ;;  %s208_s1 = inlined_call_operand.vmem [shape: f32[8,64], index: 1, kind: input, shape index: {}]   ;;  %s209_s2 = inlined_call_operand.vmem [shape: f32[1,64], index: 2, kind: input, shape index: {}]   ;;  %s210_s3 = inlined_call_operand.vmem [shape: f32[64,8], index: 3, kind: input, shape index: {}]   ;;  %s211_s4 = inlined_call_operand.vmem [shape: f32[1,8], index: 4, kind: input, shape index: {}]   ;;  %s212_s5 = inlined_call_operand.hbm [shape: f32[2,8], index: 5, kind: output, shape index: {}]  }
   0x1   :  { %v22_v0 = vld [vmem:[%s208_s1] sm:$0xff]  ;;  %v59_v2 = vld [vmem:[%s210_s3 + $0x38] sm:$0xff]  ;;  %v58_v3 = vld [vmem:[%s210_s3 + $0x30] sm:$0xff] }
   0x2   :  { %v21_v1 = vld [vmem:[%s207_s0] sm:$0x3]  ;;  %46 = vmatpush.msra.mxu0 %v22_v0  ;;  %76 = vmatpush.msra.mxu1 %v59_v2  ;;  %v57_v4 = vld [vmem:[%s210_s3 + $0x28] sm:$0xff] }
   0x3   :  { %106 = vmatmul.msk.f32.vlgmr.msra.gmra.mxu0 %vm27_vm0, %v21_v1 }
   0x4   :  { %77 = vmatpush.msra.mxu1 %v58_v3 }
   0x5   :  { %10 = vsyncpa [#allocation3], 0  ;;  %v56_v5 = vld [vmem:[%s210_s3 + $0x20] sm:$0xff]  ;;  %v55_v6 = vld [vmem:[%s210_s3 + $0x18] sm:$0xff]  ;;  %vm64_vm1 = vcmask 523264   ;;  %s137_s15 = smov [#allocation2]  }
   0x6   :  { %78 = vmatpush.msra.mxu1 %v57_v4  ;;  %v54_v7 = vld [vmem:[%s210_s3 + $0x10] sm:$0xff]  ;;  %v53_v8 = vld [vmem:[%s210_s3 + $0x8] sm:$0xff]  ;;  %v52_v9 = vld [vmem:[%s210_s3] sm:$0xff]  ;;  %s95_s16 = sshll.u32 %s137_s15, 4  ;;  %s97_s3 = sshll.u32 %s212_s5, 4  ;;  %vm88_vm2 = vcmask 58368   ;;  %s96_s16 = int_to_ptr.vmem [resolvable:$true] %s95_s16  ;;  %s98_s3 = int_to_ptr.hbm [resolvable:$true] %s97_s3 }
   0x7   :  { %v109_v10 = vld [vmem:[%s209_s2] ss:$0 sm:$0xff] }
   0x8   :  { %79 = vmatpush.msra.mxu1 %v56_v5  ;;  %v110_v14 = vld [vmem:[%s211_s4] ss:$0 sm:$0xff] }
   0xa   :  { %80 = vmatpush.msra.mxu1 %v55_v6 }
   0xc   :  { %81 = vmatpush.msra.mxu1 %v54_v7 }
   0xe   :  { %82 = vmatpush.msra.mxu1 %v53_v8 }
  0x10   :  { %83 = vmatpush.msra.mxu1 %v52_v9 }
  0x80   :  { %v48_v11 = vpop.f32.mrf.mxu0 }
  0x81   :  { %v49_v12 = vadd.f32 %v109_v10, %v48_v11 }
  0x83   :  { %v51_v13 = vmax.f32 %v49_v12, 0.0 }
  0x85   :  { %107 = vmatmul.msk.f32.vlgmr.msra.gmra.mxu1 %vm64_vm1, %v51_v13 }
 0x102   :  { %v85_v15 = vpop.f32.mrf.mxu1 }
 0x103   :  { %v86_v16 = vadd.f32 %v110_v14, %v85_v15 }
 0x105   :  { %89 = vst.msk [vmem:[#allocation2] sm:$0x3] %vm88_vm2, %v86_v16 }
 0x106   :  { %100 = dma.vmem_to_hbm [thread:$0]  %s96_s16, 32, %s98_s3, [#allocation3]  }
 0x107   :  { %135 = dma.done.wait [#allocation3], 32  }
 0x108   :  { %136 = vsyncadd [#allocation3], 4294967264 }
 0x109   :  { %105 = vsyncpa [#allocation3], 1 }

</bundles_post_ra>
